<compile_context>
chip_gen: v5e
topology: v5e:2x2
jax: 0.10.0
libtpu: 0.0.40
codegen_flags: <defaults>
</compile_context>

<pallas_src>
import jax
import jax.numpy as jnp
from jax.experimental import pallas as pl
from jax.experimental.pallas import tpu as pltpu


def frozen_bn_kernel(x_ref, scale_ref, shift_ref, o_ref):
    # x_ref/o_ref: (TR, TL) tiles.  scale/shift are either (TR, 1) f32 columns
    # (lane broadcast) or (1, TL) f32 rows (sublane broadcast); jnp
    # broadcasting handles both.  Math in f32, cast only on store.
    x = x_ref[...].astype(jnp.float32)
    o_ref[...] = (x * scale_ref[...] + shift_ref[...]).astype(o_ref.dtype)


def _round_up(a, b):
    return (a + b - 1) // b * b


def _frozen_bn_2d_launch(x2d, scale2d, shift2d, *, row_broadcast):
    """Tiled elementwise FMA over a 2-D view of x.

    row_broadcast=False: scale/shift are (R, 1) per-row columns.
    row_broadcast=True : scale/shift are (1, L) per-lane rows.
    """
    R, L = x2d.shape
    itemsize = x2d.dtype.itemsize

    LANE = 128
    SUB = {1: 32, 2: 16}.get(itemsize, 8)       # native sublane packing
    TARGET_BLOCK_BYTES = 8 * 1024 * 1024        # 2 arrays x 2 bufs x 8 MiB = 32 MiB

    # Lane tile: always a multiple of 128 (legal for any L; ragged j-boundary
    # blocks are masked).  Wider tiles -> fewer, larger DMAs.
    TL = min(_round_up(L, LANE), 4096)

    desired_tr = max(SUB, TARGET_BLOCK_BYTES // (TL * itemsize))
    if desired_tr >= R:
        TR = R                                   # full row extent: always legal
    else:
        TR = max(SUB, desired_tr // SUB * SUB)   # sublane-aligned

    # v7x megacore: avoid a single-block launch when the row count allows a
    # split (one extra grid step; measured neutral on single-TC v5e/v6e).
    if pl.cdiv(L, TL) == 1 and TR >= R and R >= 2 * SUB:
        TR = _round_up(pl.cdiv(R, 2), SUB)

    grid = (pl.cdiv(R, TR), pl.cdiv(L, TL))

    x_spec = pl.BlockSpec((TR, TL), lambda i, j: (i, j))
    if row_broadcast:
        aff_spec = pl.BlockSpec((1, TL), lambda i, j: (0, j))
    else:
        aff_spec = pl.BlockSpec((TR, 1), lambda i, j: (i, 0))

    # TODO(synk): optionally sweep pipeline_mode=pl.Buffered(3) on x_spec for
    # v7x once block sizes are frozen (review estimates a few % at best).

    bytes_accessed = (
        2 * R * L * itemsize                                   # x read + out write
        + (scale2d.size + shift2d.size) * scale2d.dtype.itemsize
    )

    return pl.pallas_call(
        frozen_bn_kernel,
        out_shape=jax.ShapeDtypeStruct((R, L), x2d.dtype),
        grid=grid,
        in_specs=[x_spec, aff_spec, aff_spec],
        out_specs=x_spec,
        compiler_params=pltpu.CompilerParams(
            dimension_semantics=("parallel", "parallel"),
            vmem_limit_bytes=40 * 1024 * 1024,
        ),
        cost_estimate=pl.CostEstimate(
            flops=2 * R * L,
            transcendentals=0,
            bytes_accessed=bytes_accessed,
        ),
    )(x2d, scale2d, shift2d)


def frozen_batch_norm_2d(x, weight, bias, running_mean, running_var, *, eps=1e-5):
    """x: (N, C, H, W); weight/bias/running_mean/running_var: (C,) buffers."""
    N, C, H, W = x.shape
    HW = H * W
    LANE = 128

    # --- per-channel affine, computed once in float32 (O(C), trivially cheap)
    w = weight.astype(jnp.float32)
    b = bias.astype(jnp.float32)
    rm = running_mean.astype(jnp.float32)
    rv = running_var.astype(jnp.float32)
    scale = w * jax.lax.rsqrt(rv + eps)          # (C,)
    shift = b - rm * scale                       # (C,)

    # Channels-folded path: lane-dense blocks with zero transpose cost when the
    # spatial extent is misaligned but C*H*W is a clean multiple of 128.
    fold_channels = (HW % LANE != 0) and ((C * HW) % LANE == 0)

    if fold_channels:
        x2d = x.reshape(N, C * HW)                           # free contiguous view
        scale2d = jnp.repeat(scale, HW).reshape(1, C * HW)   # per-lane row
        shift2d = jnp.repeat(shift, HW).reshape(1, C * HW)
        out2d = _frozen_bn_2d_launch(x2d, scale2d, shift2d, row_broadcast=True)
    else:
        x2d = x.reshape(N * C, HW)
        scale2d = jnp.tile(scale, N).reshape(N * C, 1)       # per-row column
        shift2d = jnp.tile(shift, N).reshape(N * C, 1)
        out2d = _frozen_bn_2d_launch(x2d, scale2d, shift2d, row_broadcast=False)

    return out2d.reshape(N, C, H, W)


def frozen_batch_norm_2d_ref(x, weight, bias, running_mean, running_var):
    eps = 1e-5
    w = weight.reshape(1, -1, 1, 1).astype(jnp.float32)
    b = bias.reshape(1, -1, 1, 1).astype(jnp.float32)
    rv = running_var.reshape(1, -1, 1, 1).astype(jnp.float32)
    rm = running_mean.reshape(1, -1, 1, 1).astype(jnp.float32)
    scale = w * jax.lax.rsqrt(rv + eps)
    shift = b - rm * scale
    return (x.astype(jnp.float32) * scale + shift).astype(x.dtype)


if __name__ == "__main__":
    key = jax.random.PRNGKey(0)
    kx, kw, kb, km, kv = jax.random.split(key, 5)

    # Primary test: module-consistent small shape.
    N, C, H, W = 2, 4, 16, 16
    x = jax.random.normal(kx, (N, C, H, W), dtype=jnp.float32)
    weight = jnp.ones((C,), jnp.float32) + 0.1 * jax.random.normal(kw, (C,))
    bias = jnp.zeros((C,), jnp.float32) + 0.1 * jax.random.normal(kb, (C,))
    running_mean = jnp.zeros((C,), jnp.float32) + 0.1 * jax.random.normal(km, (C,))
    running_var = jnp.ones((C,), jnp.float32) + 0.1 * jnp.abs(
        jax.random.normal(kv, (C,)))

    out = jax.block_until_ready(
        frozen_batch_norm_2d(x, weight, bias, running_mean, running_var))
    ref = frozen_batch_norm_2d_ref(x, weight, bias, running_mean, running_var)
    assert out.shape == (N, C, H, W)
    assert jnp.allclose(out, ref, atol=1e-5, rtol=1e-5)

    # Ragged-boundary path: H*W not a multiple of 128, channel fold unavailable.
    x2 = jax.random.normal(kx, (2, 4, 7, 7), dtype=jnp.float32)
    out2 = jax.block_until_ready(
        frozen_batch_norm_2d(x2, weight, bias, running_mean, running_var))
    ref2 = frozen_batch_norm_2d_ref(x2, weight, bias, running_mean, running_var)
    assert jnp.allclose(out2, ref2, atol=1e-5, rtol=1e-5)

    # Channels-folded path: H*W = 49, C = 128 (late-ResNet-style map).
    C3 = 128
    k0, k1, k2, k3 = jax.random.split(key, 4)
    x3 = jax.random.normal(k0, (2, C3, 7, 7), dtype=jnp.float32)
    w3 = jnp.ones((C3,), jnp.float32) + 0.1 * jax.random.normal(k1, (C3,))
    b3 = jnp.zeros((C3,), jnp.float32) + 0.1 * jax.random.normal(k2, (C3,))
    m3 = 0.1 * jax.random.normal(k3, (C3,))
    v3 = jnp.ones((C3,), jnp.float32) + 0.1 * jnp.abs(jax.random.normal(k0, (C3,)))
    out3 = jax.block_until_ready(frozen_batch_norm_2d(x3, w3, b3, m3, v3))
    ref3 = frozen_batch_norm_2d_ref(x3, w3, b3, m3, v3)
    assert jnp.allclose(out3, ref3, atol=1e-5, rtol=1e-5)

    print("KERNEL_OK")
</pallas_src>

<mosaic_0001>
module attributes {stable_mosaic.version = 11 : i64} {
  func.func @frozen_bn_kernel(%arg0: i32, %arg1: i32, %arg2: memref<8x256xf32, #tpu.memory_space<vmem>>, %arg3: memref<8x1xf32, #tpu.memory_space<vmem>>, %arg4: memref<8x1xf32, #tpu.memory_space<vmem>>, %arg5: memref<8x256xf32, #tpu.memory_space<vmem>>) attributes {dimension_semantics = [#tpu.dimension_semantics<parallel>, #tpu.dimension_semantics<parallel>], iteration_bounds = array<i64: 1, 1>, scalar_prefetch = 0 : i64, scratch_operands = 0 : i64, tpu.core_type = #tpu.core_type<tc>, window_params = [{transform_indices = @transform_0, window_bounds = array<i64: 8, 256>}, {transform_indices = @transform_1, window_bounds = array<i64: 8, 1>}, {transform_indices = @transform_2, window_bounds = array<i64: 8, 1>}, {transform_indices = @transform_3, window_bounds = array<i64: 8, 256>}]} {
    %c0 = arith.constant 0 : index
    %c0_0 = arith.constant 0 : index
    %0 = vector.load %arg2[%c0, %c0_0] : memref<8x256xf32, #tpu.memory_space<vmem>>, vector<8x256xf32>
    %c0_1 = arith.constant 0 : index
    %c0_2 = arith.constant 0 : index
    %1 = vector.load %arg3[%c0_1, %c0_2] : memref<8x1xf32, #tpu.memory_space<vmem>>, vector<8x1xf32>
    %2 = vector.broadcast %1 : vector<8x1xf32> to vector<8x256xf32>
    %3 = arith.mulf %0, %2 : vector<8x256xf32>
    %c0_3 = arith.constant 0 : index
    %c0_4 = arith.constant 0 : index
    %4 = vector.load %arg4[%c0_3, %c0_4] : memref<8x1xf32, #tpu.memory_space<vmem>>, vector<8x1xf32>
    %5 = vector.broadcast %4 : vector<8x1xf32> to vector<8x256xf32>
    %6 = arith.addf %3, %5 : vector<8x256xf32>
    %c0_5 = arith.constant 0 : index
    %c0_6 = arith.constant 0 : index
    %7 = vector.load %arg5[%c0_5, %c0_6] : memref<8x256xf32, #tpu.memory_space<vmem>>, vector<8x256xf32>
    tpu.vector_store %arg5[%c0_5, %c0_6], %6 {strides = array<i32>} : memref<8x256xf32, #tpu.memory_space<vmem>>, vector<8x256xf32>,
    return
  }
  func.func @transform_0(%arg0: i32, %arg1: i32) -> (i32, i32) {
    %c0_i32 = arith.constant 0 : i32
    return %arg0, %arg1 : i32, i32
  }
  func.func @transform_1(%arg0: i32, %arg1: i32) -> (i32, i32) {
    %c0_i32 = arith.constant 0 : i32
    %c0_i32_0 = arith.constant 0 : i32
    return %arg0, %c0_i32 : i32, i32
  }
  func.func @transform_2(%arg0: i32, %arg1: i32) -> (i32, i32) {
    %c0_i32 = arith.constant 0 : i32
    %c0_i32_0 = arith.constant 0 : i32
    return %arg0, %c0_i32 : i32, i32
  }
  func.func @transform_3(%arg0: i32, %arg1: i32) -> (i32, i32) {
    %c0_i32 = arith.constant 0 : i32
    return %arg0, %arg1 : i32, i32
  }
}

</mosaic_0001>

<bundles_post_ra>
// kernel: tpu_custom_call.1
= control target key start
LH: loop header
LB: loop body
LE: loop exit
PB: predicated region body
PF: predicated region fallthrough
CT: control target
= control target key end

     0   :  { %s117_s0 = inlined_call_operand.vmem [shape: f32[8,256], index: 0, kind: input, shape index: {}]   ;;  %s118_s1 = inlined_call_operand.vmem [shape: f32[8,1], index: 1, kind: input, shape index: {}]   ;;  %s119_s2 = inlined_call_operand.vmem [shape: f32[8,1], index: 2, kind: input, shape index: {}]   ;;  %s120_s3 = inlined_call_operand.hbm [shape: f32[8,256], index: 3, kind: output, shape index: {}]  }
   0x1   :  { %v17_v0 = vld [vmem:[%s118_s1] sm:$0xff] }
   0x2   :  { %8 = vsyncpa [#allocation3], 0  ;;  %v80_v1 = vmov 0   ;;  %v25_v2 = vld [vmem:[%s119_s2] sm:$0xff]  ;;  %v16_v5 = vld [vmem:[%s117_s0 + $0x8] sm:$0xff]  ;;  %s81_s1 = smov [#allocation2]  }
   0x3   :  { %53 = vset.pattern.permute.xlu0 %v80_v1  ;;  %v15_v4 = vld [vmem:[%s117_s0] sm:$0xff]  ;;  %s40_s20 = sshll.u32 %s81_s1, 4  ;;  %s42_s23 = sshll.u32 %s120_s3, 4  ;;  %s41_s20 = int_to_ptr.vmem [resolvable:$true] %s40_s20  ;;  %s43_s23 = int_to_ptr.hbm [resolvable:$true] %s42_s23 }
   0x4   :  { %20 = vperm.xlu0 %53, %v17_v0  }
   0xc   :  { %28 = vperm.xlu0 %53, %v25_v2  }
  0x76   :  { %v21_v3 = vpop.permute.xlu0 %20 }
  0x77   :  { %v23_v6 = vmul.f32 %v21_v3, %v15_v4  ;;  %v24_v7 = vmul.f32 %v21_v3, %v16_v5 }
  0x7e   :  { %v29_v8 = vpop.permute.xlu0 %28 }
  0x7f   :  { %v31_v9 = vadd.f32 %v29_v8, %v23_v6  ;;  %v32_v10 = vadd.f32 %v29_v8, %v24_v7 }
  0x81   :  { %33 = vst [vmem:[#allocation2] sm:$0xff] %v31_v9 }
  0x82   :  { %34 = vst [vmem:[#allocation2 + $0x8] sm:$0xff] %v32_v10 }
  0x83   :  { %45 = dma.vmem_to_hbm [thread:$0]  %s41_s20, 256, %s43_s23, [#allocation3]  }
  0x84   :  { %78 = dma.done.wait [#allocation3], 256  }
  0x85   :  { %79 = vsyncadd [#allocation3], 4294967040 }
  0x86   :  { %50 = vsyncpa [#allocation3], 1 }

</bundles_post_ra>
